<compile_context>
chip_gen: v7x
topology: tpu7x:2x2x1
jax: 0.10.0
libtpu: 0.0.40
codegen_flags: <defaults>
</compile_context>

<pallas_src>
import functools
import math

import jax
import jax.numpy as jnp
from jax.experimental import pallas as pl
from jax.experimental.pallas import tpu as pltpu


def _mha_kernel(res_ref, q_ref, kT_ref, v_ref, mask_ref, fc_ref, gamma_ref,
                beta_ref, out_ref, attn_ref, acc_ref, *, eps):
    g = pl.program_id(2)

    @pl.when(g == 0)
    def _init():
        acc_ref[...] = jnp.zeros_like(acc_ref)

    qh = q_ref[0]                       # (G, TQ, d_k)  compute dtype, pre-scaled
    kT = kT_ref[0]                      # (G, d_k, Lk)  pre-transposed in wrapper
    v = v_ref[0]                        # (G, Lk, d_v)
    cdt = qh.dtype

    # Scores for the whole head group: plain batched matmul, f32 accumulation.
    scores = jnp.einsum('gqc,gcs->gqs', qh, kT,
                        preferred_element_type=jnp.float32)       # (G, TQ, Lk)

    masked = mask_ref[0] != 0                                     # (TQ, Lk)
    scores = jnp.where(masked[None, :, :], -10000.0, scores)      # masked_fill_

    # Numerically stable softmax in f32; exact reciprocal of the (G, TQ, 1)
    # denominator keeps the returned attention weights exact (review note).
    scores = scores - jnp.max(scores, axis=-1, keepdims=True)
    p = jnp.exp(scores)
    attn = p * (1.0 / jnp.sum(p, axis=-1, keepdims=True))

    # Lane-dense single-shot store of this group's attention weights.
    attn_ref[0] = attn.astype(attn_ref.dtype)

    # Per-head context (batched over the group), then fold the group's slice of
    # the output projection into the f32 accumulator.
    ctx = jnp.einsum('gqs,gse->gqe', attn.astype(cdt), v,
                     preferred_element_type=jnp.float32)          # (G, TQ, d_v)
    proj = jnp.einsum('gqe,gem->gqm', ctx.astype(cdt), fc_ref[...],
                      preferred_element_type=jnp.float32)         # (G, TQ, dm)
    acc_ref[...] += jnp.sum(proj, axis=0)

    @pl.when(g == pl.num_programs(2) - 1)
    def _finalize():
        # Residual + LayerNorm(d_model), eps=1e-5, affine.
        x = res_ref[0].astype(jnp.float32) + acc_ref[...]
        mean = jnp.mean(x, axis=-1, keepdims=True)
        var = jnp.mean((x - mean) ** 2, axis=-1, keepdims=True)
        normed = (x - mean) * jax.lax.rsqrt(var + eps)
        y = normed * gamma_ref[...] + beta_ref[...]
        out_ref[0] = y.astype(out_ref.dtype)


def multi_head_attention(input_Q, input_K, input_V, attn_mask, params, *,
                         n_heads, d_k, d_v, q_block=None, heads_per_step=None,
                         compute_dtype=None, attn_dtype=None):
    assert d_k == d_v, "script assumes d_k == d_v (see head-merge reshape)"
    B, Lq, d_model = input_Q.shape
    Lk = input_K.shape[1]
    assert input_K.shape == (B, Lk, d_model)
    assert input_V.shape == (B, Lk, d_model)
    assert attn_mask.shape == (B, Lq, Lk)

    # q tiling (128 floor when it divides Lq; sweep upward on v5e/v6e if VMEM allows).
    if q_block is None:
        q_block = 128 if Lq % 128 == 0 else Lq
    assert Lq % q_block == 0
    n_q = Lq // q_block

    # Heads per grid step: largest divisor of n_heads with G*d_k <~ 256.
    if heads_per_step is None:
        cap = max(1, 256 // d_k)
        heads_per_step = max(g for g in range(1, n_heads + 1)
                             if n_heads % g == 0 and g <= cap)
    G = heads_per_step
    assert n_heads % G == 0
    n_g = n_heads // G

    cdt = jnp.dtype(compute_dtype) if compute_dtype is not None else input_Q.dtype
    adt = jnp.dtype(attn_dtype) if attn_dtype is not None else jnp.dtype(jnp.float32)

    # NOTE: the reference forward() uses W_Q for the Q, K AND V projections.
    wq3 = params["W_Q"].reshape(n_heads, d_k, d_model)          # (H, d_k, dm)
    fc3 = params["fc"].T.reshape(n_heads, d_v, d_model)         # (H, d_v, dm)
    scale = 1.0 / math.sqrt(d_k)

    # Hoisted projections: one fused XLA matmul per tensor (N = H*d_k fills the
    # MXU), K pre-transposed for the in-kernel score matmul, Q pre-scaled.
    q_proj = (jnp.einsum('bqm,hcm->bhqc', input_Q, wq3) * scale).astype(cdt)
    kT_proj = jnp.einsum('bsm,hcm->bhcs', input_K, wq3).astype(cdt)
    v_proj = jnp.einsum('bsm,hcm->bhsc', input_V, wq3).astype(cdt)
    fc3 = fc3.astype(cdt)

    gamma = params["gamma"].reshape(1, d_model).astype(jnp.float32)
    beta = params["beta"].reshape(1, d_model).astype(jnp.float32)

    # Mask travels in the caller's 1-byte form (bool -> int8 is free); any
    # numeric dtype also works (compared against 0 in the kernel).
    mask = attn_mask
    if jnp.issubdtype(mask.dtype, jnp.bool_):
        mask = mask.astype(jnp.int8)

    kernel = functools.partial(_mha_kernel, eps=1e-5)

    out_shape = (
        jax.ShapeDtypeStruct((B, Lq, d_model), input_Q.dtype),
        jax.ShapeDtypeStruct((B, n_heads, Lq, Lk), adt),
    )

    return pl.pallas_call(
        kernel,
        out_shape=out_shape,
        grid_spec=pltpu.PrefetchScalarGridSpec(
            num_scalar_prefetch=0,
            grid=(B, n_q, n_g),                      # head groups innermost (reduction)
            in_specs=[
                pl.BlockSpec((1, q_block, d_model), lambda b, qi, g: (b, qi, 0)),    # residual
                pl.BlockSpec((1, G, q_block, d_k), lambda b, qi, g: (b, g, qi, 0)),  # Q (proj)
                pl.BlockSpec((1, G, d_k, Lk), lambda b, qi, g: (b, g, 0, 0)),        # K^T (proj)
                pl.BlockSpec((1, G, Lk, d_v), lambda b, qi, g: (b, g, 0, 0)),        # V (proj)
                pl.BlockSpec((1, q_block, Lk), lambda b, qi, g: (b, qi, 0)),         # mask
                pl.BlockSpec((G, d_v, d_model), lambda b, qi, g: (g, 0, 0)),         # fc slice
                pl.BlockSpec((1, d_model), lambda b, qi, g: (0, 0)),                 # gamma
                pl.BlockSpec((1, d_model), lambda b, qi, g: (0, 0)),                 # beta
            ],
            out_specs=[
                pl.BlockSpec((1, q_block, d_model), lambda b, qi, g: (b, qi, 0)),
                pl.BlockSpec((1, G, q_block, Lk), lambda b, qi, g: (b, g, qi, 0)),
            ],
            scratch_shapes=[pltpu.VMEM((q_block, d_model), jnp.float32)],
        ),
        compiler_params=pltpu.CompilerParams(
            dimension_semantics=("parallel", "parallel", "arbitrary"),
            vmem_limit_bytes=48 * 1024 * 1024,
        ),
    )(input_Q, q_proj, kT_proj, v_proj, mask, fc3, gamma, beta)


def _reference(input_Q, input_K, input_V, attn_mask, params, *, n_heads, d_k, d_v):
    # Pure-JAX mirror of the PyTorch forward (for validation).
    B, Lq, dm = input_Q.shape
    wq, fc_w = params["W_Q"], params["fc"]
    Q = (input_Q @ wq.T).reshape(B, -1, n_heads, d_k).transpose(0, 2, 1, 3)
    K = (input_K @ wq.T).reshape(B, -1, n_heads, d_k).transpose(0, 2, 1, 3)
    V = (input_V @ wq.T).reshape(B, -1, n_heads, d_k).transpose(0, 2, 1, 3)
    scores = jnp.einsum("bhqd,bhkd->bhqk", Q, K) / math.sqrt(d_k)
    scores = jnp.where(attn_mask[:, None].astype(bool), -10000.0, scores)
    attn = jax.nn.softmax(scores, axis=-1)
    out = jnp.einsum("bhqk,bhkd->bhqd", attn, V)
    out = out.transpose(0, 2, 1, 3).reshape(B, -1, d_v * n_heads)
    out = out @ fc_w.T
    x = input_Q + out
    mean = x.mean(-1, keepdims=True)
    var = ((x - mean) ** 2).mean(-1, keepdims=True)
    normed = (x - mean) / jnp.sqrt(var + 1e-5)
    return normed * params["gamma"] + params["beta"], attn


def _make_case(key, B, L, d_model, n_heads, d_k, causal):
    k_q, k_k, k_v, k_m, k_wq, k_fc = jax.random.split(key, 6)
    input_Q = jax.random.normal(k_q, (B, L, d_model), jnp.float32)
    input_K = jax.random.normal(k_k, (B, L, d_model), jnp.float32)
    input_V = jax.random.normal(k_v, (B, L, d_model), jnp.float32)
    if causal:  # get_subsequent_mask: triu(ones, diagonal=1) -> bool
        mask = jnp.broadcast_to(jnp.triu(jnp.ones((L, L), jnp.bool_), k=1), (B, L, L))
    else:
        mask = jax.random.uniform(k_m, (B, L, L)) < 0.25
    std_q = math.sqrt(2.0 / (d_model + d_k))
    std_fc = math.sqrt(2.0 / (d_model + d_k))
    params = {
        "W_Q": std_q * jax.random.normal(k_wq, (n_heads * d_k, d_model), jnp.float32),
        "fc": std_fc * jax.random.normal(k_fc, (d_model, n_heads * d_k), jnp.float32),
        "gamma": jnp.ones((d_model,), jnp.float32),
        "beta": jnp.zeros((d_model,), jnp.float32),
    }
    return input_Q, input_K, input_V, mask, params


if __name__ == "__main__":
    key = jax.random.PRNGKey(0)
    k1, k2 = jax.random.split(key)

    # --- Case 1: toy shapes (single q tile, one head group), bf16 attn output.
    B, L, dm, H, dk = 2, 8, 32, 4, 16
    iq, ik, iv, m, p = _make_case(k1, B, L, dm, H, dk, causal=False)
    out, attn = multi_head_attention(iq, ik, iv, m, p, n_heads=H, d_k=dk, d_v=dk,
                                     attn_dtype=jnp.bfloat16)
    jax.block_until_ready((out, attn))
    out_ref, attn_ref = _reference(iq, ik, iv, m, p, n_heads=H, d_k=dk, d_v=dk)
    assert jnp.allclose(out, out_ref, atol=5e-3, rtol=5e-3)
    # bf16 attention weights: allow bf16 quantization on top of the numeric diff.
    assert jnp.allclose(attn.astype(jnp.float32), attn_ref, atol=8e-3, rtol=2e-2)

    # --- Case 2: exercises q tiling (q_block=128 < Lq), multi-group head
    # accumulation (heads_per_step=2 < n_heads), and a causal (subsequent) mask.
    B, L, dm, H, dk = 2, 256, 128, 4, 32
    iq, ik, iv, m, p = _make_case(k2, B, L, dm, H, dk, causal=True)
    out, attn = multi_head_attention(iq, ik, iv, m, p, n_heads=H, d_k=dk, d_v=dk,
                                     heads_per_step=2)
    jax.block_until_ready((out, attn))
    out_ref, attn_ref = _reference(iq, ik, iv, m, p, n_heads=H, d_k=dk, d_v=dk)
    # Looser bound: absorbs TPU matmul-precision differences between the XLA
    # reference and the MXU kernel at the larger contraction sizes.
    assert jnp.allclose(out, out_ref, atol=2e-2, rtol=2e-2)
    assert jnp.allclose(attn, attn_ref, atol=2e-2, rtol=2e-2)

    print("KERNEL_OK")
</pallas_src>

<mosaic_0001>
module attributes {stable_mosaic.version = 11 : i64} {
  func.func @_mha_kernel(%arg0: i32, %arg1: i32, %arg2: i32, %arg3: memref<1x8x32xf32, #tpu.memory_space<vmem>>, %arg4: memref<1x4x8x16xf32, #tpu.memory_space<vmem>>, %arg5: memref<1x4x16x8xf32, #tpu.memory_space<vmem>>, %arg6: memref<1x4x8x16xf32, #tpu.memory_space<vmem>>, %arg7: memref<1x8x8xi8, #tpu.memory_space<vmem>>, %arg8: memref<4x16x32xf32, #tpu.memory_space<vmem>>, %arg9: memref<1x32xf32, #tpu.memory_space<vmem>>, %arg10: memref<1x32xf32, #tpu.memory_space<vmem>>, %arg11: memref<1x8x32xf32, #tpu.memory_space<vmem>>, %arg12: memref<1x4x8x8xbf16, #tpu.memory_space<vmem>>, %arg13: memref<8x32xf32, #tpu.memory_space<vmem>>) attributes {dimension_semantics = [#tpu.dimension_semantics<parallel>, #tpu.dimension_semantics<parallel>, #tpu.dimension_semantics<arbitrary>], iteration_bounds = array<i64: 2, 1, 1>, scalar_prefetch = 0 : i64, scratch_operands = 1 : i64, tpu.core_type = #tpu.core_type<tc>, window_params = [{transform_indices = @transform_0, window_bounds = array<i64: 1, 8, 32>}, {transform_indices = @transform_1, window_bounds = array<i64: 1, 4, 8, 16>}, {transform_indices = @transform_2, window_bounds = array<i64: 1, 4, 16, 8>}, {transform_indices = @transform_3, window_bounds = array<i64: 1, 4, 8, 16>}, {transform_indices = @transform_4, window_bounds = array<i64: 1, 8, 8>}, {transform_indices = @transform_5, window_bounds = array<i64: 4, 16, 32>}, {pipeline_mode = #tpu.pipeline_mode<synchronous>, transform_indices = @transform_6, window_bounds = array<i64: 1, 32>}, {pipeline_mode = #tpu.pipeline_mode<synchronous>, transform_indices = @transform_7, window_bounds = array<i64: 1, 32>}, {transform_indices = @transform_8, window_bounds = array<i64: 1, 8, 32>}, {transform_indices = @transform_9, window_bounds = array<i64: 1, 4, 8, 8>}]} {
    %c0_i32 = arith.constant 0 : i32
    %0 = arith.cmpi eq, %arg2, %c0_i32 : i32
    %1 = arith.extui %0 : i1 to i32
    %c0_i32_0 = arith.constant 0 : i32
    %2 = arith.cmpi ne, %1, %c0_i32_0 : i32
    scf.if %2 {
      %cst_35 = arith.constant 0.000000e+00 : f32
      %44 = vector.broadcast %cst_35 : f32 to vector<8x32xf32>
      %c0_36 = arith.constant 0 : index
      %c0_37 = arith.constant 0 : index
      %45 = vector.load %arg13[%c0_36, %c0_37] : memref<8x32xf32, #tpu.memory_space<vmem>>, vector<8x32xf32>
      tpu.vector_store %arg13[%c0_36, %c0_37], %44 {strides = array<i32>} : memref<8x32xf32, #tpu.memory_space<vmem>>, vector<8x32xf32>,
    } else {
    }
    %c0 = arith.constant 0 : index
    %c0_1 = arith.constant 0 : index
    %c0_2 = arith.constant 0 : index
    %c0_3 = arith.constant 0 : index
    %3 = vector.load %arg4[%c0, %c0_1, %c0_2, %c0_3] : memref<1x4x8x16xf32, #tpu.memory_space<vmem>>, vector<1x4x8x16xf32>
    %4 = vector.shape_cast %3 : vector<1x4x8x16xf32> to vector<4x8x16xf32>
    %c0_4 = arith.constant 0 : index
    %c0_5 = arith.constant 0 : index
    %c0_6 = arith.constant 0 : index
    %c0_7 = arith.constant 0 : index
    %5 = vector.load %arg5[%c0_4, %c0_5, %c0_6, %c0_7] : memref<1x4x16x8xf32, #tpu.memory_space<vmem>>, vector<1x4x16x8xf32>
    %6 = vector.shape_cast %5 : vector<1x4x16x8xf32> to vector<4x16x8xf32>
    %c0_8 = arith.constant 0 : index
    %c0_9 = arith.constant 0 : index
    %c0_10 = arith.constant 0 : index
    %c0_11 = arith.constant 0 : index
    %7 = vector.load %arg6[%c0_8, %c0_9, %c0_10, %c0_11] : memref<1x4x8x16xf32, #tpu.memory_space<vmem>>, vector<1x4x8x16xf32>
    %8 = vector.shape_cast %7 : vector<1x4x8x16xf32> to vector<4x8x16xf32>
    "tpu.trace_start"() <{level = 10 : i32, message = "gqc,gcs->gqs"}> : () -> ()
    %cst = arith.constant dense<0.000000e+00> : vector<4x8x8xf32>
    %9 = tpu.matmul %4, %6, %cst {dimension_numbers = #tpu.dot_dimension_numbers<[2], [1], [1], [2], [0, 0, 0, 1, 1, 2], [0], [0]>} : vector<4x8x16xf32>, vector<4x16x8xf32>, vector<4x8x8xf32> -> vector<4x8x8xf32>
    "tpu.trace_stop"() : () -> ()
    %c0_12 = arith.constant 0 : index
    %c0_13 = arith.constant 0 : index
    %c0_14 = arith.constant 0 : index
    %10 = vector.load %arg7[%c0_12, %c0_13, %c0_14] : memref<1x8x8xi8, #tpu.memory_space<vmem>>, vector<1x8x8xi8>
    %11 = vector.shape_cast %10 : vector<1x8x8xi8> to vector<8x8xi8>
    %c0_i8 = arith.constant 0 : i8
    %12 = vector.broadcast %c0_i8 : i8 to vector<8x8xi8>
    %13 = arith.cmpi ne, %11, %12 : vector<8x8xi8>
    %14 = vector.shape_cast %13 : vector<8x8xi1> to vector<1x8x8xi1>
    %cst_15 = arith.constant -1.000000e+04 : f32
    %15 = vector.shape_cast %14 : vector<1x8x8xi1> to vector<1x8x8xi1>
    %16 = vector.broadcast %15 : vector<1x8x8xi1> to vector<4x8x8xi1>
    %17 = vector.broadcast %cst_15 : f32 to vector<4x8x8xf32>
    %18 = arith.select %16, %17, %9 : vector<4x8x8xi1>, vector<4x8x8xf32>
    %cst_16 = arith.constant dense<0xFF800000> : vector<4x8xf32>
    %19 = vector.multi_reduction <maximumf>, %18, %cst_16 [2] : vector<4x8x8xf32> to vector<4x8xf32>
    %20 = vector.shape_cast %19 : vector<4x8xf32> to vector<4x8x1xf32>
    %21 = vector.broadcast %20 : vector<4x8x1xf32> to vector<4x8x8xf32>
    %22 = arith.subf %18, %21 : vector<4x8x8xf32>
    %23 = math.exp %22 : vector<4x8x8xf32>
    %cst_17 = arith.constant dense<0.000000e+00> : vector<4x8xf32>
    %24 = vector.multi_reduction <add>, %23, %cst_17 [2] : vector<4x8x8xf32> to vector<4x8xf32>
    %25 = vector.shape_cast %24 : vector<4x8xf32> to vector<4x8x1xf32>
    %cst_18 = arith.constant 1.000000e+00 : f32
    %26 = vector.broadcast %cst_18 : f32 to vector<4x8x1xf32>
    %27 = arith.divf %26, %25 : vector<4x8x1xf32>
    %28 = vector.broadcast %27 : vector<4x8x1xf32> to vector<4x8x8xf32>
    %29 = arith.mulf %23, %28 : vector<4x8x8xf32>
    %30 = arith.truncf %29 : vector<4x8x8xf32> to vector<4x8x8xbf16>
    %c0_19 = arith.constant 0 : index
    %c0_20 = arith.constant 0 : index
    %c0_21 = arith.constant 0 : index
    %c0_22 = arith.constant 0 : index
    %31 = vector.load %arg12[%c0_19, %c0_20, %c0_21, %c0_22] : memref<1x4x8x8xbf16, #tpu.memory_space<vmem>>, vector<1x4x8x8xbf16>
    %32 = vector.shape_cast %31 : vector<1x4x8x8xbf16> to vector<4x8x8xbf16>
    %33 = vector.shape_cast %30 : vector<4x8x8xbf16> to vector<1x4x8x8xbf16>
    tpu.vector_store %arg12[%c0_19, %c0_20, %c0_21, %c0_22], %33 {strides = array<i32>} : memref<1x4x8x8xbf16, #tpu.memory_space<vmem>>, vector<1x4x8x8xbf16>,
    "tpu.trace_start"() <{level = 10 : i32, message = "gqs,gse->gqe"}> : () -> ()
    %cst_23 = arith.constant dense<0.000000e+00> : vector<4x8x16xf32>
    %34 = tpu.matmul %29, %8, %cst_23 {dimension_numbers = #tpu.dot_dimension_numbers<[2], [1], [1], [2], [0, 0, 0, 1, 1, 2], [0], [0]>} : vector<4x8x8xf32>, vector<4x8x16xf32>, vector<4x8x16xf32> -> vector<4x8x16xf32>
    "tpu.trace_stop"() : () -> ()
    %c0_24 = arith.constant 0 : index
    %c0_25 = arith.constant 0 : index
    %c0_26 = arith.constant 0 : index
    %35 = vector.load %arg8[%c0_24, %c0_25, %c0_26] : memref<4x16x32xf32, #tpu.memory_space<vmem>>, vector<4x16x32xf32>
    "tpu.trace_start"() <{level = 10 : i32, message = "gqe,gem->gqm"}> : () -> ()
    %cst_27 = arith.constant dense<0.000000e+00> : vector<4x8x32xf32>
    %36 = tpu.matmul %34, %35, %cst_27 {dimension_numbers = #tpu.dot_dimension_numbers<[2], [1], [1], [2], [0, 0, 0, 1, 1, 2], [0], [0]>} : vector<4x8x16xf32>, vector<4x16x32xf32>, vector<4x8x32xf32> -> vector<4x8x32xf32>
    "tpu.trace_stop"() : () -> ()
    %c0_28 = arith.constant 0 : index
    %c0_29 = arith.constant 0 : index
    %37 = vector.load %arg13[%c0_28, %c0_29] : memref<8x32xf32, #tpu.memory_space<vmem>>, vector<8x32xf32>
    %cst_30 = arith.constant dense<0.000000e+00> : vector<8x32xf32>
    %38 = vector.multi_reduction <add>, %36, %cst_30 [0] : vector<4x8x32xf32> to vector<8x32xf32>
    %39 = arith.addf %37, %38 : vector<8x32xf32>
    %c0_31 = arith.constant 0 : index
    %c0_32 = arith.constant 0 : index
    %40 = vector.load %arg13[%c0_31, %c0_32] : memref<8x32xf32, #tpu.memory_space<vmem>>, vector<8x32xf32>
    tpu.vector_store %arg13[%c0_31, %c0_32], %39 {strides = array<i32>} : memref<8x32xf32, #tpu.memory_space<vmem>>, vector<8x32xf32>,
    %c0_i32_33 = arith.constant 0 : i32
    %41 = arith.cmpi eq, %arg2, %c0_i32_33 : i32
    %42 = arith.extui %41 : i1 to i32
    %c0_i32_34 = arith.constant 0 : i32
    %43 = arith.cmpi ne, %42, %c0_i32_34 : i32
    scf.if %43 {
      %c0_35 = arith.constant 0 : index
      %c0_36 = arith.constant 0 : index
      %c0_37 = arith.constant 0 : index
      %44 = vector.load %arg3[%c0_35, %c0_36, %c0_37] : memref<1x8x32xf32, #tpu.memory_space<vmem>>, vector<1x8x32xf32>
      %45 = vector.shape_cast %44 : vector<1x8x32xf32> to vector<8x32xf32>
      %c0_38 = arith.constant 0 : index
      %c0_39 = arith.constant 0 : index
      %46 = vector.load %arg13[%c0_38, %c0_39] : memref<8x32xf32, #tpu.memory_space<vmem>>, vector<8x32xf32>
      %47 = arith.addf %45, %46 : vector<8x32xf32>
      %cst_40 = arith.constant dense<0.000000e+00> : vector<8xf32>
      %48 = vector.multi_reduction <add>, %47, %cst_40 [1] : vector<8x32xf32> to vector<8xf32>
      %49 = vector.shape_cast %48 : vector<8xf32> to vector<8x1xf32>
      %cst_41 = arith.constant 3.200000e+01 : f32
      %50 = vector.broadcast %cst_41 : f32 to vector<8x1xf32>
      %51 = arith.divf %49, %50 : vector<8x1xf32>
      %52 = vector.broadcast %51 : vector<8x1xf32> to vector<8x32xf32>
      %53 = arith.subf %47, %52 : vector<8x32xf32>
      %54 = arith.mulf %53, %53 : vector<8x32xf32>
      %cst_42 = arith.constant dense<0.000000e+00> : vector<8xf32>
      %55 = vector.multi_reduction <add>, %54, %cst_42 [1] : vector<8x32xf32> to vector<8xf32>
      %56 = vector.shape_cast %55 : vector<8xf32> to vector<8x1xf32>
      %cst_43 = arith.constant 3.200000e+01 : f32
      %57 = vector.broadcast %cst_43 : f32 to vector<8x1xf32>
      %58 = arith.divf %56, %57 : vector<8x1xf32>
      %59 = vector.broadcast %51 : vector<8x1xf32> to vector<8x32xf32>
      %60 = arith.subf %47, %59 : vector<8x32xf32>
      %cst_44 = arith.constant 9.99999974E-6 : f32
      %61 = vector.broadcast %cst_44 : f32 to vector<8x1xf32>
      %62 = arith.addf %58, %61 : vector<8x1xf32>
      %63 = math.rsqrt %62 : vector<8x1xf32>
      %64 = vector.broadcast %63 : vector<8x1xf32> to vector<8x32xf32>
      %65 = arith.mulf %60, %64 : vector<8x32xf32>
      %c0_45 = arith.constant 0 : index
      %c0_46 = arith.constant 0 : index
      %66 = vector.load %arg9[%c0_45, %c0_46] : memref<1x32xf32, #tpu.memory_space<vmem>>, vector<1x32xf32>
      %67 = vector.broadcast %66 : vector<1x32xf32> to vector<8x32xf32>
      %68 = arith.mulf %65, %67 : vector<8x32xf32>
      %c0_47 = arith.constant 0 : index
      %c0_48 = arith.constant 0 : index
      %69 = vector.load %arg10[%c0_47, %c0_48] : memref<1x32xf32, #tpu.memory_space<vmem>>, vector<1x32xf32>
      %70 = vector.broadcast %69 : vector<1x32xf32> to vector<8x32xf32>
      %71 = arith.addf %68, %70 : vector<8x32xf32>
      %c0_49 = arith.constant 0 : index
      %c0_50 = arith.constant 0 : index
      %c0_51 = arith.constant 0 : index
      %72 = vector.load %arg11[%c0_49, %c0_50, %c0_51] : memref<1x8x32xf32, #tpu.memory_space<vmem>>, vector<1x8x32xf32>
      %73 = vector.shape_cast %72 : vector<1x8x32xf32> to vector<8x32xf32>
      %74 = vector.shape_cast %71 : vector<8x32xf32> to vector<1x8x32xf32>
      tpu.vector_store %arg11[%c0_49, %c0_50, %c0_51], %74 {strides = array<i32>} : memref<1x8x32xf32, #tpu.memory_space<vmem>>, vector<1x8x32xf32>,
    } else {
    }
    return
  }
  func.func @transform_0(%arg0: i32, %arg1: i32, %arg2: i32) -> (i32, i32, i32) {
    %c0_i32 = arith.constant 0 : i32
    %c0_i32_0 = arith.constant 0 : i32
    return %arg0, %arg1, %c0_i32 : i32, i32, i32
  }
  func.func @transform_1(%arg0: i32, %arg1: i32, %arg2: i32) -> (i32, i32, i32, i32) {
    %c0_i32 = arith.constant 0 : i32
    %c0_i32_0 = arith.constant 0 : i32
    return %arg0, %arg2, %arg1, %c0_i32 : i32, i32, i32, i32
  }
  func.func @transform_2(%arg0: i32, %arg1: i32, %arg2: i32) -> (i32, i32, i32, i32) {
    %c0_i32 = arith.constant 0 : i32
    %c0_i32_0 = arith.constant 0 : i32
    %c0_i32_1 = arith.constant 0 : i32
    return %arg0, %arg2, %c0_i32, %c0_i32_0 : i32, i32, i32, i32
  }
  func.func @transform_3(%arg0: i32, %arg1: i32, %arg2: i32) -> (i32, i32, i32, i32) {
    %c0_i32 = arith.constant 0 : i32
    %c0_i32_0 = arith.constant 0 : i32
    %c0_i32_1 = arith.constant 0 : i32
    return %arg0, %arg2, %c0_i32, %c0_i32_0 : i32, i32, i32, i32
  }
  func.func @transform_4(%arg0: i32, %arg1: i32, %arg2: i32) -> (i32, i32, i32) {
    %c0_i32 = arith.constant 0 : i32
    %c0_i32_0 = arith.constant 0 : i32
    return %arg0, %arg1, %c0_i32 : i32, i32, i32
  }
  func.func @transform_5(%arg0: i32, %arg1: i32, %arg2: i32) -> (i32, i32, i32) {
    %c0_i32 = arith.constant 0 : i32
    %c0_i32_0 = arith.constant 0 : i32
    %c0_i32_1 = arith.constant 0 : i32
    return %arg2, %c0_i32, %c0_i32_0 : i32, i32, i32
  }
  func.func @transform_6(%arg0: i32, %arg1: i32, %arg2: i32) -> (i32, i32) {
    %c0_i32 = arith.constant 0 : i32
    %c0_i32_0 = arith.constant 0 : i32
    %c0_i32_1 = arith.constant 0 : i32
    return %c0_i32, %c0_i32_0 : i32, i32
  }
  func.func @transform_7(%arg0: i32, %arg1: i32, %arg2: i32) -> (i32, i32) {
    %c0_i32 = arith.constant 0 : i32
    %c0_i32_0 = arith.constant 0 : i32
    %c0_i32_1 = arith.constant 0 : i32
    return %c0_i32, %c0_i32_0 : i32, i32
  }
  func.func @transform_8(%arg0: i32, %arg1: i32, %arg2: i32) -> (i32, i32, i32) {
    %c0_i32 = arith.constant 0 : i32
    %c0_i32_0 = arith.constant 0 : i32
    return %arg0, %arg1, %c0_i32 : i32, i32, i32
  }
  func.func @transform_9(%arg0: i32, %arg1: i32, %arg2: i32) -> (i32, i32, i32, i32) {
    %c0_i32 = arith.constant 0 : i32
    %c0_i32_0 = arith.constant 0 : i32
    return %arg0, %arg2, %arg1, %c0_i32 : i32, i32, i32, i32
  }
}

</mosaic_0001>

<bundles_post_ra>
// kernel: tpu_custom_call.1
= control target key start
LH: loop header
LB: loop body
LE: loop exit
PB: predicated region body
PF: predicated region fallthrough
CT: control target
= control target key end

     0   :  { %s2668_s0 = inlined_call_operand.hbm [shape: f32[2,8,32], index: 0, kind: input, shape index: {}]   ;;  %s2669_s1 = inlined_call_operand.vmem [shape: f32[2,4,8,16], index: 1, kind: input, shape index: {}]   ;;  %s2670_s2 = inlined_call_operand.vmem [shape: f32[2,4,16,8], index: 2, kind: input, shape index: {}]   ;;  %s2671_s3 = inlined_call_operand.vmem [shape: f32[2,4,8,16], index: 3, kind: input, shape index: {}]   ;;  %s2672_s4 = inlined_call_operand.vmem [shape: s8[2,8,8], index: 4, kind: input, shape index: {}]   ;;  %s2673_s5 = inlined_call_operand.vmem [shape: f32[4,16,32], index: 5, kind: input, shape index: {}]   ;;  %s2674_s6 = inlined_call_operand.vmem [shape: f32[1,32], index: 6, kind: input, shape index: {}]   ;;  %s2675_s7 = inlined_call_operand.vmem [shape: f32[1,32], index: 7, kind: input, shape index: {}]   ;;  %s2676_s8 = inlined_call_operand.hbm [shape: f32[2,8,32], index: 8, kind: output, shape index: {0}]   ;;  %s2677_s9 = inlined_call_operand.hbm [shape: bf16[2,4,8,8], index: 9, kind: output, shape index: {1}]  }
   0x1   :  { %2681 = sst [smem:[#allocation13_spill]] %s2668_s0 }
   0x2   :  { %15 = vsyncpa [#allocation4], 0 }
   0x3   :  { %17 = vsyncpa [#allocation4 + $0x1], 0 }
   0x4   :  { %18 = vsyncpa [#allocation5], 0 }
   0x5   :  { %20 = vsyncpa [#allocation5 + $0x1], 0 }
   0x6   :  { %21 = vsyncpa [#allocation8], 0 }
   0x7   :  { %23 = vsyncpa [#allocation8 + $0x1], 0  ;;  %s2308_s30 = smov 0   ;;  %s2310_s10 = smov 0  }
   0x8   :  { %s2312_s11 = smov 0   ;;  %s2314_s12 = smov 0  }
   0x9   :  { %s2316_s13 = smov 0   ;;  %s2318_s14 = smov 0  }
   0xa LB: > { %s1837_s15 = sadd.s32 4294967295, %s2247_s14   ;;  %s1838_s16 = sadd.s32 4294967294, %s2247_s14   ;;  %s2247_s14 = sphi %s2318_s14, %s29_s14   ;;  %s2243_s13 = sphi %s2316_s13, %s2702_s13   ;;  %s2239_s12 = sphi %s2314_s12, %s2701_s12   ;;  %s2235_s11 = sphi %s2312_s11, %s2700_s11   ;;  %s2231_s10 = sphi %s2310_s10, %s2699_s10   ;;  %s2227_s30 = sphi %s2308_s30, %s2698_s30  }
   0xb   : > { %s48_s17 = sadd.s32 1, %s2243_s13  ;;  %s57_s18 = sadd.s32 1, %s2235_s11 }
   0xc   : > { %p50_p0 = scmp.ge.s32.totalorder %s48_s17, 2  ;;  %p64_p1 = scmp.ne.s32.totalorder %s2235_s11, %s2231_s10 }
   0xd   : > { %p65_p2 = scmp.eq.s32.totalorder %s2247_s14, 0  ;;  %p70_p3 = scmp.ne.s32.totalorder %s2231_s10, %s2227_s30 }
   0xe   : > { %s2704_s17 = smov (%p50_p0, %s48_s17), 0  ;;  %p71_p5 = scmp.eq.s32.totalorder %s1837_s15, 0 }
   0xf   : > { %2682 = sst [smem:[#allocation12_spill]] %s2704_s17  ;;  %p2349_p4 = por %p65_p2, %p64_p1 }
  0x10   : > { %s52_s20 = ssub.s32 %s2243_s13, %s2704_s17  ;;  %p278_p6 = scmp.eq.s32.totalorder %s1837_s15, 1 }
  0x11   : > { %p55_p7 = scmp.eq.s32.totalorder %s52_s20, 0  ;;  %p2355_p8 = por %p71_p5, %p70_p3 }
  0x12   : > { %p2359_p9 = por %p278_p6, %p64_p1  ;;  %p284_p10 = scmp.eq.s32.totalorder %s1838_s16, 1 }
  0x13   : > { %s2364_s23 = scalar_select %p55_p7, %s2235_s11, %s57_s18  }
  0x14   : > { %s2685_s22 = scalar_select %p2359_p9, 1, 0 }
  0x15   : > { %p2366_p11 = por %p284_p10, %p70_p3  ;;  %p2029_p13 = scmp.lt.s32.totalorder %s2247_s14, 2 }
  0x16   : > { %s350_s25 = sand.u32 1, %s2235_s11   ;;  %s1843_s27 = sshll.u32 %s2243_s13, 7 }
  0x17   : > { %s2686_s24 = scalar_select %p2366_p11, 1, 0 }
  0x18   : > { %s1842_s26 = sshll.u32 %s350_s25, 3  ;;  %s2687_s0 = sld [smem:[#allocation13_spill]] }
  0x19   : > { %s354_s16 = scalar_lea.vmem [#allocation3], %s1842_s26  ;;  %p2383_p0 = pnand %p2029_p13, %p2349_p4 }
  0x1a   : > { %s362_s18 = sshll.u32 %s354_s16, 4  ;;  %s351_s28 = scalar_lea.sflag [#allocation4], %s350_s25  ;;  %s2379_s18 = int_to_ptr.vmem [resolvable:$true] %s362_s18 }
  0x1b   : > { %p2105_p5 = pneg %p2383_p0 }
  0x1e   : > { %s2377_s15 = scalar_lea.hbm %s2687_s0, %s1843_s27  ;;  %s2108_s19 = scalar_lea.hbm %s2687_s0, 256 }
  0x1f   : > { %s2103_s27 = scalar_lea.hbm %s2377_s15, 128  ;;  %p2109_p4 = scmp.lt.u32.totalorder %s2377_s15, %s2687_s0 }
  0x20   : > { %p2104_p3 = scmp.ne.s32.totalorder %s2377_s15, %s2103_s27  ;;  %p2110_p10 = scmp.lt.u32.totalorder %s2108_s19, %s2103_s27 }
  0x21   : > { %p2112_p12 = scmp.lt.u32.totalorder %s2103_s27, %s2377_s15 }
  0x22   : > { %p2106_p6 = pnand %p2105_p5, %p2104_p3  ;;  %p2111_p13 = por %p2110_p10, %p2109_p4 }
  0x24   : > { %p2107_p7 = pneg %p2106_p6  ;;  %p2113_p1 = por %p2112_p12, %p2111_p13 }
  0x26   : > { %p2114_p2 = pnand %p2113_p1, %p2107_p7 }
  0x28   : > { %2117 = shalt.err (!%p2114_p2)
}
  0x29   : > { %s2118_s25 = scalar_lea.vmem %s2379_s18, 128  ;;  %s2249_s26 = smov [#allocation3]  }
  0x2a   : > { %p2119_p3 = scmp.ne.s32.totalorder %s2379_s18, %s2118_s25  ;;  %s2123_s29 = sshll.u32 %s2249_s26, 4  ;;  %s2124_s29 = int_to_ptr.vmem [resolvable:$false] %s2123_s29 }
  0x2b   : > { %s2125_s17 = scalar_lea.vmem %s2124_s29, 256  ;;  %p2126_p9 = scmp.lt.s32.totalorder %s2379_s18, %s2124_s29 }
  0x2c   : > { %p2121_p6 = pnand %p2119_p3, %p2105_p5  ;;  %p2127_p4 = scmp.lt.s32.totalorder %s2125_s17, %s2118_s25 }
  0x2e   : > { %p2122_p11 = pneg %p2121_p6  ;;  %p2128_p10 = por %p2127_p4, %p2126_p9 }
  0x30   : > { %p2129_p12 = pnand %p2128_p10, %p2122_p11 }
  0x32   : > { %2132 = shalt.err (!%p2129_p12)
}
  0x33   : > { %2021 = dma.hbm_to_vmem [thread:$0]  (!%p2383_p0), %s2377_s15, 128, %s2379_s18, %s351_s28  }
  0x34   : > { %p2689_p1 = scmp.lt.s32.totalorder %s2247_s14, 3  ;;  %p2690_p2 = scmp.ge.s32.totalorder %s2247_s14, 1 }
  0x36   : > { %p421_p5 = pnand %p2690_p2, %p2689_p1 }
  0x37   : > { %s2419_s27 = sand.u32 (!%p421_p5), 1, %s2231_s10  }
  0x38   : > { %424 = sbr.rel (%p421_p5) target bundleno = 1377 (0x561), region = 52  ;;  %s2680_s19 = sshll.u32 (!%p421_p5), %s2419_s27, 3 }
  0x39   : > { %s427_s16 = scalar_lea.sflag (!%p421_p5), [#allocation4], %s2419_s27  ;;  %s2425_s20 = scalar_lea.vmem (!%p421_p5), [#allocation3], %s2680_s19 }
  0x3f   : > { %2214 = dma.done.wait (%p2355_p8), %s427_s16, 128  }
  0x40   : > { %2216 = vsyncadd (%p2355_p8), %s427_s16, 4294967168  ;;  %p515_p9 = scmp.lt.s32.totalorder %s2239_s12, 1  ;;  %v2250_v0 = vmov 0.0|0.0   ;;  %vm2251_vm0 = vmmov 0   ;;  %v2252_v1 = vmov 0.0   ;;  %vm587_vm1 = vcmask 130048  }
  0x41   : > { %1988 = vmatprep.subr.bf16.mxu0 %v2250_v0  ;;  %1916 = vmatprep.mubr.msk.f32.mxu0 %vm2251_vm0, %v2252_v1  ;;  %v2253_v19 = vmov 0   ;;  %vm891_vm4 = vcmask 64512   ;;  %vm944_vm5 = vcmask 60416   ;;  %vm569_vm6 = vcmask 261120   ;;  %p2693_p11 = scmp.ne.s32.totalorder %s2685_s22, 0 }
  0x42   : > { %s2436_s15 = scalar_select %p515_p9, %s2239_s12, 1  ;;  %1991 = vmatprep.subr.bf16.mxu1 %v2250_v0  ;;  %1923 = vmatprep.mubr.msk.f32.mxu1 %vm2251_vm0, %v2252_v1  ;;  %570 = vst.msk [vmem:[#allocation2] sm:$0xff] %vm569_vm6, %v2252_v1 }
  0x44   : > { %s1877_s21 = sshll.u32 %s2436_s15, 6  ;;  %s1876_s18 = sshll.u32 %s2436_s15, 5 }
  0x45   : > { %s536_s26 = scalar_lea.vmem %s2670_s2, %s1877_s21  ;;  %s525_s16 = scalar_lea.vmem %s2669_s1, %s1876_s18 }
  0x46   : > { %v575_v2 = vld [vmem:[%s536_s26] sm:$0xff]  ;;  %v576_v3 = vld [vmem:[%s536_s26 + $0x8] sm:$0xff]  ;;  %v577_v5 = vld [vmem:[%s536_s26 + $0x10] sm:$0xff]  ;;  %s1854_s21 = sshll.u32 %s2436_s15, 1  ;;  %s1847_s15 = sshll.u32 %s2419_s27, 4 }
  0x47   : > { %v1989_v4 = vpack.c.bf16 %v576_v3, %v575_v2  ;;  %v578_v6 = vld [vmem:[%s536_s26 + $0x18] sm:$0xff]  ;;  %v579_v7 = vld [vmem:[%s536_s26 + $0x20] sm:$0xff]  ;;  %v580_v9 = vld [vmem:[%s536_s26 + $0x28] sm:$0xff] }
  0x48   : > { %v1992_v8 = vpack.c.bf16 %v578_v6, %v577_v5  ;;  %v571_v10 = vld [vmem:[%s525_s16] sm:$0xff]  ;;  %v1995_v11 = vpack.c.bf16 %v580_v9, %v579_v7  ;;  %v581_v12 = vld [vmem:[%s536_s26 + $0x30] sm:$0xff]  ;;  %v582_v13 = vld [vmem:[%s536_s26 + $0x38] sm:$0xff]  ;;  %s554_s26 = scalar_lea.vmem %s2672_s4, %s1854_s21 }
  0x49   : > { %1990 = vmatpush3.bf16.msra.mxu0 %v1989_v4  ;;  %v572_v14 = vld [vmem:[%s525_s16 + $0x8] sm:$0xff]  ;;  %v1998_v15 = vpack.c.bf16 %v582_v13, %v581_v12  ;;  %v573_v16 = vld [vmem:[%s525_s16 + $0x10] sm:$0xff]  ;;  %v574_v17 = vld [vmem:[%s525_s16 + $0x18] sm:$0xff]  ;;  %s2496_s16 = scalar_lea.vmem %s2671_s3, %s1876_s18  ;;  %s1879_s18 = sshll.u32 %s2239_s12, 8 }
  0x4a   : > { %1994 = vmatprep.subr.bf16.mxu0 %v2250_v0  ;;  %1993 = vmatpush3.bf16.msra.mxu1 %v1992_v8  ;;  %v880_v18 = vld [vmem:[%s554_s26] sm:$0x3]  ;;  %v584_v60 = vld [vmem:[%s2496_s16 + $0x8] sm:$0xff]  ;;  %v585_v5 = vld [vmem:[%s2496_s16 + $0x10] sm:$0xff]  ;;  %s2513_s26 = scalar_lea.vmem [#allocation7], %s1847_s15  ;;  %s2578_s29 = scalar_lea.hbm %s2677_s9, %s1879_s18 }
  0x4b   : > { %1997 = vmatprep.subr.bf16.mxu1 %v2250_v0  ;;  %vm881_vm2 = vnez %v880_v18  ;;  %v583_v59 = vld [vmem:[%s2496_s16] sm:$0xff]  ;;  %v1242_v7 = vld [vmem:[%s2673_s5 + $0x8] sm:$0xff]  ;;  %v586_v12 = vld [vmem:[%s2496_s16 + $0x18] sm:$0xff]  ;;  %s1625_s21 = sshll.u32 %s2513_s26, 4  ;;  %s2254_s16 = smov [#allocation7]   ;;  %s2580_s21 = int_to_ptr.vmem [resolvable:$true] %s1625_s21 }
  0x4c   : > { %1917 = vmatmul.mubr.msk.f32.vlgmr.msra.gmra.mrb[0].mxu0 %vm587_vm1, %v571_v10  ;;  %v882_v20 = vsel %vm881_vm2, 16843009, %v2253_v19  ;;  %v1241_v6 = vld [vmem:[%s2673_s5] sm:$0xff]  ;;  %s2133_s17 = scalar_lea.vmem %s2580_s21, 256  ;;  %s2137_s15 = sshll.u32 %s2254_s16, 4  ;;  %s2138_s15 = int_to_ptr.vmem [resolvable:$false] %s2137_s15 }
  0x4d   : > { %1996 = vmatpush3.bf16.msra.mxu0 %v1995_v11  ;;  %1930 = vmatprep.mubr.msk.f32.mxu0 %vm2251_vm0, %v2252_v1  ;;  %v883_v21 = vunpack.c.0.s8 %v882_v20  ;;  %v2001_v13 = vpack.c.bf16 %v1242_v7, %v1241_v6  ;;  %v1243_v20 = vld [vmem:[%s2673_s5 + $0x10] sm:$0xff]  ;;  %p2134_p8 = scmp.ne.s32.totalorder %s2580_s21, %s2133_s17  ;;  %p2140_p13 = scmp.lt.s32.totalorder %s2580_s21, %s2138_s15 }
  0x4e   : > { %1924 = vmatmul.mubr.msk.f32.vlgmr.msra.gmra.mrb[0].mxu1 %vm587_vm1, %v572_v14  ;;  %1940 = vmatprep.subr.mxu0 %v2252_v1 }
  0x4f   : > { %1999 = vmatpush3.bf16.msra.mxu1 %v1998_v15  ;;  %1937 = vmatprep.mubr.msk.f32.mxu1 %vm2251_vm0, %v2252_v1  ;;  %vm2471_vm3 = vcmp.ne.s32.totalorder %v883_v21, 0  ;;  %v1244_v21 = vld [vmem:[%s2673_s5 + $0x18] sm:$0xff]  ;;  %p2135_p0 = pnand %p2134_p8, %p2693_p11 }
  0x50   : > { %1931 = vmatmul.mubr.msk.f32.vlgmr.msra.gmra.mrb[2].mxu0 %vm587_vm1, %v573_v16  ;;  %1945 = vmatprep.subr.mxu1 %v2252_v1  ;;  %v2004_v22 = vpack.c.bf16 %v1244_v21, %v1243_v20 }
  0x51   : > { %1942 = vmatprep.mubr.msk.f32.mxu0 %vm2251_vm0, %v2252_v1  ;;  %1941 = vmatpush3.msra.mxu0 %v583_v59  ;;  %p2136_p7 = pneg %p2135_p0 }
  0x52   : > { %1938 = vmatmul.mubr.msk.f32.vlgmr.msra.gmra.mrb[2].mxu1 %vm587_vm1, %v574_v17  ;;  %1950 = vmatprep.subr.mxu0 %v2252_v1 }
  0x53   : > { %1947 = vmatprep.mubr.msk.f32.mxu1 %vm2251_vm0, %v2252_v1  ;;  %1946 = vmatpush3.msra.mxu1 %v584_v60 }
  0x54   : > { %1955 = vmatprep.subr.mxu1 %v2252_v1 }
 0x11f   : > { %v657_v23 = vpop.f32.mrb[0].mxu0 }
 0x120   : > { %v887_v24 = vsel %vm2471_vm3, -10000.0, %v657_v23  ;;  %v1918_v25 = vpop.f32.mrb[1].mxu0  ;;  %v1245_v23 = vld [vmem:[%s2673_s5 + $0x20] sm:$0xff] }
 0x121   : > { %v892_v26 = vsel %vm891_vm4, %v887_v24, -inf  ;;  %v730_v27 = vpop.f32.mrb[0].mxu1 }
 0x122   : > { %893 = vmax.xlane.f32.xlu0 %v892_v26  ;;  %v888_v28 = vsel %vm2471_vm3, -10000.0, %v730_v27  ;;  %v1925_v29 = vpop.f32.mrb[1].mxu1  ;;  %v1247_v26 = vld [vmem:[%s2673_s5 + $0x30] sm:$0xff] }
 0x123   : > { %v803_v30 = vpop.f32.mrb[2].mxu0  ;;  %v895_v31 = vsel %vm891_vm4, %v888_v28, -inf }
 0x124   : > { %v889_v32 = vsel %vm2471_vm3, -10000.0, %v803_v30  ;;  %v1932_v33 = vpop.f32.mrb[3].mxu0 }
 0x125   : > { %v898_v34 = vsel %vm891_vm4, %v889_v32, -inf  ;;  %v876_v35 = vpop.f32.mrb[2].mxu1 }
 0x126   : > { %896 = vmax.xlane.f32.xlu0 %v895_v31  ;;  %899 = vmax.xlane.f32.xlu1 %v898_v34  ;;  %v890_v36 = vsel %vm2471_vm3, -10000.0, %v876_v35  ;;  %v1939_v37 = vpop.f32.mrb[3].mxu1 }
 0x127   : > { %v901_v38 = vsel %vm891_vm4, %v890_v36, -inf }
 0x12a   : > { %902 = vmax.xlane.f32.xlu1 %v901_v38 }
 0x1af   : > { %v894_v39 = vpop.xlane.xlu0 %893 }
 0x1b0   : > { %v904_v40 = vsub.f32 %v887_v24, %v894_v39  ;;  %v1246_v24 = vld [vmem:[%s2673_s5 + $0x28] sm:$0xff] }
 0x1b1   : > { %v2007_v25 = vpack.c.bf16 %v1246_v24, %v1245_v23 }
 0x1b2   : > { %v908_v41 = vmul.f32 1.442695, %v904_v40 }
 0x1b3   : > { %v897_v42 = vpop.xlane.xlu0 %896  ;;  %v900_v43 = vpop.xlane.xlu1 %899 }
 0x1b4   : > { %2085 = vpow2.f32 %v908_v41  ;;  %v905_v44 = vsub.f32 %v888_v28, %v897_v42  ;;  %v906_v45 = vsub.f32 %v889_v32, %v900_v43 }
 0x1b6   : > { %v910_v46 = vmul.f32 1.442695, %v905_v44  ;;  %v912_v47 = vmul.f32 1.442695, %v906_v45 }
 0x1b7   : > { %v903_v48 = vpop.xlane.xlu1 %902 }
 0x1b8   : > { %2087 = vpow2.f32 %v910_v46  ;;  %v907_v49 = vsub.f32 %v890_v36, %v903_v48 }
 0x1b9   : > { %2089 = vpow2.f32 %v912_v47  ;;  %v1541_v47 = vld [vmem:[#allocation2] sm:$0xff] }
 0x1ba   : > { %v914_v50 = vmul.f32 1.442695, %v907_v49 }
 0x1bc   : > { %2091 = vpow2.f32 %v914_v50 }
 0x1be   : > { %v2086_v51 = vpop.eup %2085 }
 0x1bf   : > { %v916_v52 = vsel %vm891_vm4, %v2086_v51, 0.0 }
 0x1c0   : > { %917 = vadd.xlane.f32.xlu0 %v916_v52  ;;  %v1555_v52 = vld [vmem:[%s2425_s20] sm:$0xff]  ;;  %s1595_s20 = scalar_lea.sflag [#allocation8], %s2419_s27 }
 0x1c2   : > { %v2088_v53 = vpop.eup %2087 }
 0x1c3   : > { %v2090_v54 = vpop.eup %2089  ;;  %v919_v55 = vsel %vm891_vm4, %v2088_v53, 0.0 }
 0x1c4   : > { %920 = vadd.xlane.f32.xlu1 %v919_v55  ;;  %v922_v56 = vsel %vm891_vm4, %v2090_v54, 0.0 }
 0x1c5   : > { %923 = vadd.xlane.f32.xlu0 %v922_v56 }
 0x1c6   : > { %v2092_v57 = vpop.eup %2091 }
 0x1c7   : > { %v925_v58 = vsel %vm891_vm4, %v2092_v57, 0.0 }
 0x1c8   : > { %926 = vadd.xlane.f32.xlu1 %v925_v58 }
 0x24d   : > { %v918_v61 = vpop.xlane.xlu0 %917 }
 0x24e   : > { %2093 = vrcp.f32 %v918_v61 }
 0x251   : > { %v921_v62 = vpop.xlane.xlu1 %920 }
 0x252   : > { %v924_v63 = vpop.xlane.xlu0 %923  ;;  %2095 = vrcp.f32 %v921_v62 }
 0x253   : > { %2097 = vrcp.f32 %v924_v63 }
 0x255   : > { %v927_v2 = vpop.xlane.xlu1 %926 }
 0x256   : > { %2099 = vrcp.f32 %v927_v2 }
 0x258   : > { %v2094_v3 = vpop.eup %2093 }
 0x259   : > { %v936_v4 = vmul.f32 %v2094_v3, %v2086_v51 }
 0x25b   : > { %v940_v8 = vpack.c.bf16 %v936_v4, %v936_v4  ;;  %1943 = vmatmul.mubr.msk.f32.vlgmr.msra.gmra.mrb[4].mxu0 %vm891_vm4, %v936_v4 }
 0x25c   : > { %v2096_v9 = vpop.eup %2095  ;;  %1951 = vmatpush3.msra.mxu0 %v585_v5  ;;  %1952 = vmatprep.mubr.msk.f32.mxu0 %vm2251_vm0, %v2252_v1 }
 0x25d   : > { %v2098_v10 = vpop.eup %2097  ;;  %945 = vst.msk [vmem:[%s2513_s26] sm:$0xf] %vm944_vm5, %v940_v8  ;;  %v937_v11 = vmul.f32 %v2096_v9, %v2088_v53  ;;  %2000 = vmatprep.subr.bf16.mxu0 %v2250_v0 }
 0x25e   : > { %v938_v14 = vmul.f32 %v2098_v10, %v2090_v54 }
 0x25f   : > { %v941_v15 = vpack.c.bf16 %v937_v11, %v937_v11  ;;  %1948 = vmatmul.mubr.msk.f32.vlgmr.msra.gmra.mrb[4].mxu1 %vm891_vm4, %v937_v11 }
 0x260   : > { %v2100_v16 = vpop.eup %2099  ;;  %v942_v17 = vpack.c.bf16 %v938_v14, %v938_v14  ;;  %1953 = vmatmul.mubr.msk.f32.vlgmr.msra.gmra.mrb[6].mxu0 %vm891_vm4, %v938_v14  ;;  %1956 = vmatpush3.msra.mxu1 %v586_v12 }
 0x261   : > { %946 = vst.msk [vmem:[%s2513_s26 + $0x4] sm:$0xf] %vm944_vm5, %v941_v15  ;;  %v939_v18 = vmul.f32 %v2100_v16, %v2092_v57  ;;  %1957 = vmatprep.mubr.msk.f32.mxu1 %vm2251_vm0, %v2252_v1  ;;  %2002 = vmatpush3.bf16.msra.mxu0 %v2001_v13 }
 0x262   : > { %947 = vst.msk [vmem:[%s2513_s26 + $0x8] sm:$0xf] %vm944_vm5, %v942_v17  ;;  %1964 = vmatprep.mubr.msk.f32.mxu0 %vm2251_vm0, %v2252_v1  ;;  %2003 = vmatprep.subr.bf16.mxu1 %v2250_v0 }
 0x263   : > { %v943_v19 = vpack.c.bf16 %v939_v18, %v939_v18  ;;  %1958 = vmatmul.mubr.msk.f32.vlgmr.msra.gmra.mrb[6].mxu1 %vm891_vm4, %v939_v18  ;;  %2006 = vmatprep.subr.bf16.mxu0 %v2250_v0 }
 0x264   : > { %1971 = vmatprep.mubr.msk.f32.mxu1 %vm2251_vm0, %v2252_v1  ;;  %2005 = vmatpush3.bf16.msra.mxu1 %v2004_v22 }
 0x265   : > { %948 = vst.msk [vmem:[%s2513_s26 + $0xc] sm:$0xf] %vm944_vm5, %v943_v19  ;;  %2009 = vmatprep.subr.bf16.mxu1 %v2250_v0  ;;  %v1248_v0 = vld [vmem:[%s2673_s5 + $0x38] sm:$0xff]  ;;  %s2139_s26 = scalar_lea.vmem %s2138_s15, 512 }
 0x266   : > { %v2010_v29 = vpack.c.bf16 %v1248_v0, %v1247_v26  ;;  %p2141_p3 = scmp.lt.s32.totalorder %s2139_s26, %s2133_s17 }
 0x268   : > { %p2142_p6 = por %p2141_p3, %p2140_p13 }
 0x26a   : > { %p2143_p4 = pnand %p2142_p6, %p2136_p7 }
 0x32e   : > { %v1018_v27 = vpop.f32.mrb[4].mxu0 }
 0x32f   : > { %v1944_v28 = vpop.f32.mrb[5].mxu0  ;;  %1965 = vmatmul.mubr.msk.f32.vlgmr.msra.gmra.mrb[8].mxu0 %vm587_vm1, %v1018_v27 }
 0x330   : > { %2008 = vmatpush3.bf16.msra.mxu0 %v2007_v25  ;;  %1978 = vmatprep.mubr.msk.f32.mxu0 %vm2251_vm0, %v2252_v1 }
 0x332   : > { %v1091_v30 = vpop.f32.mrb[4].mxu1 }
 0x333   : > { %v1164_v31 = vpop.f32.mrb[6].mxu0  ;;  %v1949_v32 = vpop.f32.mrb[5].mxu1  ;;  %1972 = vmatmul.mubr.msk.f32.vlgmr.msra.gmra.mrb[8].mxu1 %vm587_vm1, %v1091_v30 }
 0x334   : > { %v1954_v33 = vpop.f32.mrb[7].mxu0  ;;  %1979 = vmatmul.mubr.msk.f32.vlgmr.msra.gmra.mrb[10].mxu0 %vm587_vm1, %v1164_v31  ;;  %2011 = vmatpush3.bf16.msra.mxu1 %v2010_v29 }
 0x335   : > { %1985 = vmatprep.mubr.msk.f32.mxu1 %vm2251_vm0, %v2252_v1 }
 0x336   : > { %v1237_v34 = vpop.f32.mrb[6].mxu1 }
 0x337   : > { %v1959_v35 = vpop.f32.mrb[7].mxu1  ;;  %1986 = vmatmul.mubr.msk.f32.vlgmr.msra.gmra.mrb[10].mxu1 %vm587_vm1, %v1237_v34 }
 0x402   : > { %v1318_v36 = vpop.f32.mrb[8].mxu0 }
 0x403   : > { %v1966_v37 = vpop.f32.mrb[9].mxu0  ;;  %v1543_v39 = vsel %vm569_vm6, %v1318_v36, 0.0 }
 0x406   : > { %v1391_v38 = vpop.f32.mrb[8].mxu1 }
 0x407   : > { %v1544_v40 = vsel %vm569_vm6, %v1391_v38, 0.0  ;;  %v1464_v41 = vpop.f32.mrb[10].mxu0  ;;  %v1973_v42 = vpop.f32.mrb[9].mxu1 }
 0x408   : > { %v1545_v43 = vadd.f32 %v1544_v40, %v1543_v39  ;;  %v1980_v44 = vpop.f32.mrb[11].mxu0  ;;  %v1546_v45 = vsel %vm569_vm6, %v1464_v41, 0.0 }
 0x40a   : > { %v1547_v46 = vadd.f32 %v1546_v45, %v1545_v43  ;;  %v1537_v1 = vpop.f32.mrb[10].mxu1 }
 0x40b   : > { %v1548_v48 = vsel %vm569_vm6, %v1537_v1, 0.0  ;;  %v1987_v49 = vpop.f32.mrb[11].mxu1 }
 0x40c   : > { %v1549_v50 = vadd.f32 %v1548_v48, %v1547_v46 }
 0x40e   : > { %v1550_v51 = vadd.f32 %v1549_v50, %v1541_v47 }
 0x410   : > { %1551 = vst.msk [vmem:[#allocation2] sm:$0xff] %vm569_vm6, %v1550_v51 }
 0x417   : > { %v1556_v53 = vld [vmem:[#allocation2] sm:$0xff] }
 0x418   : > { %v1557_v54 = vadd.f32 %v1556_v53, %v1555_v52 }
 0x41a   : > { %v1558_v55 = vsel %vm569_vm6, %v1557_v54, 0.0 }
 0x41b   : > { %1559 = vadd.xlane.f32.xlu0 %v1558_v55 }
 0x4a8   : > { %v1560_v56 = vpop.xlane.xlu0 %1559 }
 0x4a9   : > { %v1562_v57 = vmul.f32 0.03125, %v1560_v56 }
 0x4ab   : > { %v1563_v58 = vsub.f32 %v1557_v54, %v1562_v57 }
 0x4ad   : > { %v1564_v59 = vmul.f32 %v1563_v58, %v1563_v58 }
 0x4af   : > { %v1565_v60 = vsel %vm569_vm6, %v1564_v59, 0.0 }
 0x4b0   : > { %1566 = vadd.xlane.f32.xlu1 %v1565_v60 }
 0x4b1   : > { %2146 = shalt.err (!%p2143_p4)
}
 0x4b2   : > { %s2147_s18 = scalar_lea.hbm %s2578_s29, 256  ;;  %s2151_s16 = scalar_lea.hbm %s2677_s9, 512 }
 0x4b3   : > { %p2148_p10 = scmp.ne.s32.totalorder %s2578_s29, %s2147_s18  ;;  %p2152_p2 = scmp.lt.u32.totalorder %s2578_s29, %s2677_s9 }
 0x4b4   : > { %p2153_p5 = scmp.lt.u32.totalorder %s2151_s16, %s2147_s18  ;;  %p2155_p8 = scmp.lt.u32.totalorder %s2147_s18, %s2578_s29 }
 0x4b5   : > { %p2149_p12 = pnand %p2148_p10, %p2693_p11 }
 0x4b6   : > { %p2154_p9 = por %p2153_p5, %p2152_p2 }
 0x4b7   : > { %p2150_p1 = pneg %p2149_p12 }
 0x4b8   : > { %p2156_p0 = por %p2155_p8, %p2154_p9 }
 0x4ba   : > { %p2157_p7 = pnand %p2156_p0, %p2150_p1 }
 0x4bc   : > { %2160 = shalt.err (!%p2157_p7)
}
 0x4bd   : > { %s2255_s17 = smov 64   ;;  %s2256_s26 = smov 4   ;;  %v1867_v3 = vld [vmem:[%s2674_s6] ss:$0 sm:$0xff] }
 0x4be   : > { %2015 = dma.vmem_to_hbm [thread:$0]  (%p2693_p11), %s2580_s21, 256, %s2578_s29, %s1595_s20, %s2255_s17, %s2255_s17, %s2256_s26  }
 0x4bf   : > { %v1868_v5 = vld [vmem:[%s2675_s7] ss:$0 sm:$0xff]  ;;  %s1871_s16 = sshll.u32 %s2239_s12, 7  ;;  %s2694_s15 = sshll.u32 %s2419_s27, 3 }
 0x4c0   : > { %s506_s0 = scalar_lea.vmem [#allocation6], %s2694_s15  ;;  %s2618_s17 = scalar_lea.hbm %s2676_s8, %s1871_s16 }
 0x4c1   : > { %s1609_s21 = sshll.u32 %s506_s0, 4  ;;  %s1590_s26 = scalar_lea.sflag [#allocation5], %s2419_s27  ;;  %s2620_s21 = int_to_ptr.vmem [resolvable:$true] %s1609_s21 }
 0x4c2   : > { %s2161_s19 = scalar_lea.vmem %s2620_s21, 128  ;;  %s2257_s12 = smov [#allocation6]  }
 0x4c3   : > { %p2162_p13 = scmp.ne.s32.totalorder %s2620_s21, %s2161_s19  ;;  %s2165_s18 = sshll.u32 %s2257_s12, 4  ;;  %s2166_s18 = int_to_ptr.vmem [resolvable:$false] %s2165_s18 }
 0x4c4   : > { %s2167_s28 = scalar_lea.vmem %s2166_s18, 256  ;;  %p2168_p4 = scmp.lt.s32.totalorder %s2620_s21, %s2166_s18 }
 0x4c5   : > { %p2163_p3 = pnand %p2162_p13, %p2693_p11  ;;  %p2169_p10 = scmp.lt.s32.totalorder %s2167_s28, %s2161_s19 }
 0x4c7   : > { %p2164_p6 = pneg %p2163_p3  ;;  %p2170_p12 = por %p2169_p10, %p2168_p4 }
 0x4c9   : > { %p2171_p1 = pnand %p2170_p12, %p2164_p6 }
 0x53d   : > { %v1567_v61 = vpop.xlane.xlu1 %1566 }
 0x53e   : > { %v1568_v62 = vmul.f32 0.03125, %v1567_v61 }
 0x540   : > { %v1569_v63 = vadd.f32 1e-05, %v1568_v62 }
 0x542   : > { %2101 = vrsqrt.f32 %v1569_v63 }
 0x54c   : > { %v2102_v2 = vpop.eup %2101 }
 0x54d   : > { %v1571_v4 = vmul.f32 %v2102_v2, %v1563_v58 }
 0x54f   : > { %v1579_v6 = vmul.f32 %v1867_v3, %v1571_v4 }
 0x551   : > { %v1587_v7 = vadd.f32 %v1868_v5, %v1579_v6 }
 0x553   : > { %1588 = vst.msk [vmem:[%s506_s0] sm:$0xff] %vm569_vm6, %v1587_v7 }
 0x554   : > { %2174 = shalt.err (!%p2171_p1)
}
 0x555   : > { %s2175_s0 = scalar_lea.hbm %s2618_s17, 128  ;;  %s2179_s16 = scalar_lea.hbm %s2676_s8, 256 }
 0x556   : > { %p2176_p2 = scmp.ne.s32.totalorder %s2618_s17, %s2175_s0  ;;  %p2180_p8 = scmp.lt.u32.totalorder %s2618_s17, %s2676_s8 }
 0x557   : > { %p2181_p0 = scmp.lt.u32.totalorder %s2179_s16, %s2175_s0  ;;  %p2183_p13 = scmp.lt.u32.totalorder %s2175_s0, %s2618_s17 }
 0x558   : > { %p2177_p5 = pnand %p2176_p2, %p2693_p11 }
 0x559   : > { %p2182_p7 = por %p2181_p0, %p2180_p8 }
 0x55a   : > { %p2178_p9 = pneg %p2177_p5 }
 0x55b   : > { %p2184_p3 = por %p2183_p13, %p2182_p7 }
 0x55d   : > { %p2185_p6 = pnand %p2184_p3, %p2178_p9 }
 0x55f   : > { %2188 = shalt.err (!%p2185_p6)
}
 0x560   : > { %2014 = dma.vmem_to_hbm [thread:$0]  (%p2693_p11), %s2620_s21, 128, %s2618_s17, %s1590_s26  }
 0x561 PF: > { %s1640_s20 = sand.u32 1, %s2227_s30   ;;  %p2695_p4 = scmp.ne.s32.totalorder %s2686_s24, 0 }
 0x562   : > { %p2696_p10 = scmp.ge.s32.totalorder %s2247_s14, 2  ;;  %s1641_s19 = scalar_lea.sflag [#allocation5], %s1640_s20 }
 0x564   : > { %p2023_p12 = pnand %p2696_p10, %p2695_p4 }
 0x566   : > { %2218 = dma.done.wait (!%p2023_p12), %s1641_s19, 128  }
 0x567   : > { %2220 = vsyncadd (!%p2023_p12), %s1641_s19, 4294967168  ;;  %s1650_s12 = scalar_lea.sflag [#allocation8], %s1640_s20 }
 0x568   : > { %2222 = dma.done.wait (!%p2023_p12), %s1650_s12, 256  }
 0x569   : > { %2224 = vsyncadd (!%p2023_p12), %s1650_s12, 4294967040  ;;  %s29_s14 = sadd.s32 1, %s2247_s14   ;;  %s2697_s22 = sld [smem:[#allocation12_spill]] }
 0x56a   : > { %p26_p1 = scmp.ge.s32.totalorder %s29_s14, 4   ;;  %s2698_s30 = smov %s2231_s10 }
 0x56b   : > { %s2699_s10 = smov %s2235_s11  ;;  %s2700_s11 = smov %s2364_s23 }
 0x56c   : > { %s2701_s12 = smov %s2243_s13  ;;  %28 = sbr.rel (!%p26_p1) target bundleno = 10 (0xa), region = 137 }
 0x56f   : > { %s2702_s13 = smov %s2697_s22 }
 0x573   :  { %1655 = vsyncpa [#allocation4], 1 }
 0x574   :  { %1657 = vsyncpa [#allocation4 + $0x1], 1 }
 0x575   :  { %1658 = vsyncpa [#allocation5], 1 }
 0x576   :  { %1660 = vsyncpa [#allocation5 + $0x1], 1 }
 0x577   :  { %1661 = vsyncpa [#allocation8], 1 }
 0x578   :  { %1663 = vsyncpa [#allocation8 + $0x1], 1 }

</bundles_post_ra>
